<compile_context>
chip_gen: v5e
topology: v5e:2x2
jax: 0.10.0
libtpu: 0.0.40
codegen_flags: <defaults>
</compile_context>

<pallas_src>
import functools

import jax
import jax.numpy as jnp
from jax import lax
from jax.experimental import pallas as pl
from jax.experimental.pallas import tpu as pltpu

# Full-precision f32 matmuls for the pure-JAX reference (and kernel trace).
jax.config.update("jax_default_matmul_precision", "highest")

_VMEM_LIMIT = 64 * 1024 * 1024  # safe on v5e/v6e (128 MiB) and v7x (64 MiB)


def _round_up(n, m):
    return ((n + m - 1) // m) * m


def _pad_gate_axis(w, h, hp):
    """Pad the trailing 4*h gate axis to 4*hp, per gate block (i,f,g,o)."""
    lead = w.shape[:-1]
    w4 = w.reshape(lead + (4, h))
    w4 = jnp.pad(w4, [(0, 0)] * len(lead) + [(0, 0), (0, hp - h)])
    return w4.reshape(lead + (4 * hp,))


# ---------------------------------------------------------------------------
# Phase 1: gates_x = X @ W_ih^T + b      (parallel over 128-wide gate lanes)
# ---------------------------------------------------------------------------
def _gates_x_kernel(x_ref, wih_ref, b_ref, gx_ref):
    gx_ref[...] = (
        jnp.dot(x_ref[...], wih_ref[...], preferred_element_type=jnp.float32)
        + b_ref[...]
    )


# ---------------------------------------------------------------------------
# Phase 2: sequential LSTM recurrence (only h @ W_hh inside the time loop)
# ---------------------------------------------------------------------------
def _lstm_recurrence_kernel(gx_ref, whh_ref, h_out_ref, h_sc, c_sc, *,
                            t_blk, hp):
    """gx_ref: (T_BLK, B, 4*HP)  precomputed input gates (bias included)
       whh_ref: (HP, 4*HP)       hidden->gates weights (transposed, padded)
       h_out_ref: (T_BLK, B, HP) hidden states for this block of time steps
       h_sc/c_sc: (B, HP)        recurrent state, persists across grid steps
    """
    @pl.when(pl.program_id(0) == 0)
    def _():
        h_sc[...] = jnp.zeros_like(h_sc)
        c_sc[...] = jnp.zeros_like(c_sc)

    # Short static inner loop over the time steps of this block.
    for tt in range(t_blk):
        gates = gx_ref[tt] + jnp.dot(
            h_sc[...], whh_ref[...], preferred_element_type=jnp.float32
        )  # (B, 4*HP), PyTorch gate order i, f, g, o — each slice lane-aligned
        i = jax.nn.sigmoid(gates[:, 0 * hp:1 * hp])
        f = jax.nn.sigmoid(gates[:, 1 * hp:2 * hp])
        g = jnp.tanh(gates[:, 2 * hp:3 * hp])
        o = jax.nn.sigmoid(gates[:, 3 * hp:4 * hp])
        c = f * c_sc[...] + i * g
        h = o * jnp.tanh(c)
        c_sc[...] = c
        h_sc[...] = h
        h_out_ref[tt] = h.astype(h_out_ref.dtype)


# ---------------------------------------------------------------------------
# Phase 3: vocab projection  (parallel over 128-wide vocab tiles)
# ---------------------------------------------------------------------------
def _proj_kernel(h_ref, wl_ref, bl_ref, out_ref):
    out_ref[...] = (
        jnp.dot(h_ref[...], wl_ref[...], preferred_element_type=jnp.float32)
        + bl_ref[...]
    ).astype(out_ref.dtype)


# ---------------------------------------------------------------------------
# Wrapper: full LSTM decoder (time-major x), returns logits (T, B, V)
# ---------------------------------------------------------------------------
def lstm_decoder_pallas(x, w_ih_t, w_hh_t, b, w_lin_t, b_lin):
    """x: (T, B, E) float32 time-major. Returns logits (T, B, V) float32."""
    T, B, E = x.shape
    H = w_hh_t.shape[0]
    V = w_lin_t.shape[1]
    HP = _round_up(H, 128)       # lane-aligned hidden size
    VP = _round_up(V, 128)       # lane-aligned vocab size

    # ---- zero-pad weights to lane-aligned shapes (padding is inert) --------
    wih_p = _pad_gate_axis(w_ih_t, H, HP)                           # (E, 4HP)
    whh_p = _pad_gate_axis(jnp.pad(w_hh_t, ((0, HP - H), (0, 0))),
                           H, HP)                                   # (HP, 4HP)
    b_p = _pad_gate_axis(b.reshape(1, 4 * H), H, HP)                # (1, 4HP)
    wl_p = jnp.pad(w_lin_t, ((0, HP - H), (0, VP - V)))             # (HP, VP)
    bl_p = jnp.pad(b_lin.reshape(1, V), ((0, 0), (0, VP - V)))      # (1, VP)

    M = T * B
    MP = _round_up(M, 8)
    x_flat = x.reshape(M, E).astype(jnp.float32)
    if MP != M:
        x_flat = jnp.pad(x_flat, ((0, MP - M), (0, 0)))

    # ---- Phase 1: input gates (hoisted off the sequential path) ------------
    TN = 128
    gx_flat = pl.pallas_call(
        _gates_x_kernel,
        out_shape=jax.ShapeDtypeStruct((MP, 4 * HP), jnp.float32),
        grid_spec=pltpu.PrefetchScalarGridSpec(
            num_scalar_prefetch=0,
            grid=(4 * HP // TN,),
            in_specs=[
                pl.BlockSpec((MP, E), lambda j: (0, 0)),
                pl.BlockSpec((E, TN), lambda j: (0, j)),
                pl.BlockSpec((1, TN), lambda j: (0, j)),
            ],
            out_specs=pl.BlockSpec((MP, TN), lambda j: (0, j)),
        ),
        compiler_params=pltpu.CompilerParams(
            dimension_semantics=("parallel",),
            vmem_limit_bytes=_VMEM_LIMIT,
        ),
    )(x_flat, wih_p, b_p)
    gx = gx_flat[:M].reshape(T, B, 4 * HP)

    # ---- Phase 2: recurrence, T_BLK time steps per grid iteration ----------
    T_BLK = 1
    for cand in (8, 4, 2, 1):
        if T % cand == 0:
            T_BLK = cand
            break
    rec_kernel = functools.partial(_lstm_recurrence_kernel, t_blk=T_BLK, hp=HP)
    h_all = pl.pallas_call(
        rec_kernel,
        out_shape=jax.ShapeDtypeStruct((T, B, HP), jnp.float32),
        grid_spec=pltpu.PrefetchScalarGridSpec(
            num_scalar_prefetch=0,
            grid=(T // T_BLK,),
            in_specs=[
                pl.BlockSpec((T_BLK, B, 4 * HP), lambda t: (t, 0, 0)),
                pl.BlockSpec((HP, 4 * HP), lambda t: (0, 0)),
            ],
            out_specs=pl.BlockSpec((T_BLK, B, HP), lambda t: (t, 0, 0)),
            scratch_shapes=[
                pltpu.VMEM((B, HP), jnp.float32),   # h
                pltpu.VMEM((B, HP), jnp.float32),   # c
            ],
        ),
        compiler_params=pltpu.CompilerParams(
            dimension_semantics=("arbitrary",),     # recurrence: sequential
            vmem_limit_bytes=_VMEM_LIMIT,
        ),
    )(gx, whh_p)

    # ---- Phase 3: batched vocab projection ----------------------------------
    h_flat = h_all.reshape(M, HP)
    if MP != M:
        h_flat = jnp.pad(h_flat, ((0, MP - M), (0, 0)))
    TV = 128
    logits_flat = pl.pallas_call(
        _proj_kernel,
        out_shape=jax.ShapeDtypeStruct((MP, VP), jnp.float32),
        grid_spec=pltpu.PrefetchScalarGridSpec(
            num_scalar_prefetch=0,
            grid=(VP // TV,),
            in_specs=[
                pl.BlockSpec((MP, HP), lambda j: (0, 0)),
                pl.BlockSpec((HP, TV), lambda j: (0, j)),
                pl.BlockSpec((1, TV), lambda j: (0, j)),
            ],
            out_specs=pl.BlockSpec((MP, TV), lambda j: (0, j)),
        ),
        compiler_params=pltpu.CompilerParams(
            dimension_semantics=("parallel",),
            vmem_limit_bytes=_VMEM_LIMIT,
        ),
    )(h_flat, wl_p, bl_p)

    return logits_flat[:M, :V].reshape(T, B, V)


def decoder_rnn_forward(params, features, captions):
    """Exact semantics of DecoderRNN.forward (eval mode)."""
    # Embedding lookup of captions[:, :-1]  -> (batch, seq-1, embed).
    # Gather is left to XLA; a Pallas DMA-gather is not worth it at this size.
    embeddings = jnp.take(params["embed"], captions[:, :-1], axis=0)
    # Dropout(0.5) in eval mode = identity.
    # Concat image features as the first "word": (batch, seq, embed)
    x = jnp.concatenate([features[:, None, :], embeddings], axis=1)
    # nn.LSTM with batch_first=False: axis 0 is time.  The module passes the
    # (batch, seq, embed) tensor directly, so T=batch, B=seq (reproduced).
    logits = lstm_decoder_pallas(
        x.astype(jnp.float32),
        params["w_ih_t"], params["w_hh_t"], params["b_lstm"],
        params["w_lin_t"], params["b_lin"],
    )
    return logits  # (batch, seq, vocab)


def lstm_decoder_ref(x, w_ih_t, w_hh_t, b, w_lin_t, b_lin):
    """Pure-JAX reference (lax.scan) for correctness check."""
    H = w_hh_t.shape[0]

    def step(carry, xt):
        h, c = carry
        gates = xt @ w_ih_t + h @ w_hh_t + b           # (B, 4H) + (1, 4H)
        i = jax.nn.sigmoid(gates[:, 0 * H:1 * H])
        f = jax.nn.sigmoid(gates[:, 1 * H:2 * H])
        g = jnp.tanh(gates[:, 2 * H:3 * H])
        o = jax.nn.sigmoid(gates[:, 3 * H:4 * H])
        c = f * c + i * g
        h = o * jnp.tanh(c)
        return (h, c), h

    B = x.shape[1]
    h0 = jnp.zeros((B, H), jnp.float32)
    c0 = jnp.zeros((B, H), jnp.float32)
    _, hs = lax.scan(step, (h0, c0), x)
    return hs @ w_lin_t + b_lin                         # (T, B, V)


if __name__ == "__main__":
    # Small, deterministic configuration.
    batch, seq = 2, 8          # captions: (batch, seq) int ids
    embed_size = 32
    hidden_size = 32
    vocab_size = 64

    key = jax.random.PRNGKey(0)
    ks = jax.random.split(key, 8)
    H, E, V = hidden_size, embed_size, vocab_size
    s = 1.0 / jnp.sqrt(jnp.float32(H))

    params = {
        "embed":   jax.random.normal(ks[0], (V, E), jnp.float32) * 0.1,
        # PyTorch stores weight_ih_l0 as (4H, E); we keep the transpose (E, 4H).
        "w_ih_t":  jax.random.uniform(ks[1], (E, 4 * H), jnp.float32, -s, s),
        "w_hh_t":  jax.random.uniform(ks[2], (H, 4 * H), jnp.float32, -s, s),
        "b_lstm":  (jax.random.uniform(ks[3], (1, 4 * H), jnp.float32, -s, s)
                    + jax.random.uniform(ks[4], (1, 4 * H), jnp.float32, -s, s)),
        "w_lin_t": jax.random.uniform(ks[5], (H, V), jnp.float32, -s, s),
        "b_lin":   jax.random.uniform(ks[6], (1, V), jnp.float32, -s, s),
    }

    features = jax.random.normal(ks[7], (batch, E), jnp.float32)
    captions = jax.random.randint(jax.random.PRNGKey(1), (batch, seq), 0, V)

    out = decoder_rnn_forward(params, features, captions)
    out = jax.block_until_ready(out)
    assert out.shape == (batch, seq, vocab_size), out.shape

    # Cross-check against pure-JAX reference.
    embeddings = jnp.take(params["embed"], captions[:, :-1], axis=0)
    x = jnp.concatenate([features[:, None, :], embeddings], axis=1)
    ref = lstm_decoder_ref(
        x.astype(jnp.float32),
        params["w_ih_t"], params["w_hh_t"], params["b_lstm"],
        params["w_lin_t"], params["b_lin"],
    )
    max_err = float(jnp.max(jnp.abs(out - ref)))
    assert jnp.allclose(out, ref, atol=5e-4, rtol=5e-4), max_err

    print("KERNEL_OK")
</pallas_src>

<mosaic_0001>
module attributes {stable_mosaic.version = 11 : i64} {
  func.func @_gates_x_kernel(%arg0: i32, %arg1: memref<16x32xf32, #tpu.memory_space<vmem>>, %arg2: memref<32x128xf32, #tpu.memory_space<vmem>>, %arg3: memref<1x128xf32, #tpu.memory_space<vmem>>, %arg4: memref<16x128xf32, #tpu.memory_space<vmem>>) attributes {dimension_semantics = [#tpu.dimension_semantics<parallel>], iteration_bounds = array<i64: 4>, scalar_prefetch = 0 : i64, scratch_operands = 0 : i64, tpu.core_type = #tpu.core_type<tc>, window_params = [{pipeline_mode = #tpu.pipeline_mode<synchronous>, transform_indices = @transform_0, window_bounds = array<i64: 16, 32>}, {transform_indices = @transform_1, window_bounds = array<i64: 32, 128>}, {transform_indices = @transform_2, window_bounds = array<i64: 1, 128>}, {transform_indices = @transform_3, window_bounds = array<i64: 16, 128>}]} {
    %c0 = arith.constant 0 : index
    %c0_0 = arith.constant 0 : index
    %0 = vector.load %arg1[%c0, %c0_0] : memref<16x32xf32, #tpu.memory_space<vmem>>, vector<16x32xf32>
    %c0_1 = arith.constant 0 : index
    %c0_2 = arith.constant 0 : index
    %1 = vector.load %arg2[%c0_1, %c0_2] : memref<32x128xf32, #tpu.memory_space<vmem>>, vector<32x128xf32>
    %cst = arith.constant dense<0.000000e+00> : vector<16x128xf32>
    %2 = tpu.matmul %0, %1, %cst {dimension_numbers = #tpu.dot_dimension_numbers<[1], [0], [0], [1], [0, 0, 1, 1], [], []>, precision = #tpu.contract_precision<fp32>} : vector<16x32xf32>, vector<32x128xf32>, vector<16x128xf32> -> vector<16x128xf32>
    %c0_3 = arith.constant 0 : index
    %c0_4 = arith.constant 0 : index
    %3 = vector.load %arg3[%c0_3, %c0_4] : memref<1x128xf32, #tpu.memory_space<vmem>>, vector<1x128xf32>
    %4 = vector.broadcast %3 : vector<1x128xf32> to vector<16x128xf32>
    %5 = arith.addf %2, %4 : vector<16x128xf32>
    %c0_5 = arith.constant 0 : index
    %c0_6 = arith.constant 0 : index
    %6 = vector.load %arg4[%c0_5, %c0_6] : memref<16x128xf32, #tpu.memory_space<vmem>>, vector<16x128xf32>
    tpu.vector_store %arg4[%c0_5, %c0_6], %5 {strides = array<i32>} : memref<16x128xf32, #tpu.memory_space<vmem>>, vector<16x128xf32>,
    return
  }
  func.func @transform_0(%arg0: i32) -> (i32, i32) {
    %c0_i32 = arith.constant 0 : i32
    %c0_i32_0 = arith.constant 0 : i32
    %c0_i32_1 = arith.constant 0 : i32
    return %c0_i32, %c0_i32_0 : i32, i32
  }
  func.func @transform_1(%arg0: i32) -> (i32, i32) {
    %c0_i32 = arith.constant 0 : i32
    %c0_i32_0 = arith.constant 0 : i32
    return %c0_i32, %arg0 : i32, i32
  }
  func.func @transform_2(%arg0: i32) -> (i32, i32) {
    %c0_i32 = arith.constant 0 : i32
    %c0_i32_0 = arith.constant 0 : i32
    return %c0_i32, %arg0 : i32, i32
  }
  func.func @transform_3(%arg0: i32) -> (i32, i32) {
    %c0_i32 = arith.constant 0 : i32
    %c0_i32_0 = arith.constant 0 : i32
    return %c0_i32, %arg0 : i32, i32
  }
}

</mosaic_0001>

<bundles_post_ra>
// kernel: tpu_custom_call.1
= control target key start
LH: loop header
LB: loop body
LE: loop exit
PB: predicated region body
PF: predicated region fallthrough
CT: control target
= control target key end

     0   :  { %8 = vsyncpa [#allocation3], 0  ;;  %s1080_s0 = inlined_call_operand.hbm [shape: f32[16,32], index: 0, kind: input, shape index: {}]   ;;  %s1081_s1 = inlined_call_operand.hbm [shape: f32[32,512], index: 1, kind: input, shape index: {}]   ;;  %s1082_s2 = inlined_call_operand.hbm [shape: f32[1,512], index: 2, kind: input, shape index: {}]   ;;  %s1083_s3 = inlined_call_operand.hbm [shape: f32[16,512], index: 3, kind: output, shape index: {}]  }
   0x1   :  { %9 = vsyncpa [#allocation6], 0 }
   0x2   :  { %11 = vsyncpa [#allocation6 + $0x1], 0 }
   0x3   :  { %12 = vsyncpa [#allocation4], 0 }
   0x4   :  { %14 = vsyncpa [#allocation4 + $0x1], 0  ;;  %s870_s12 = smov 0   ;;  %s872_s13 = smov 0  }
   0x5   :  { %s874_s14 = smov 0   ;;  %s876_s15 = smov 0  }
   0x6 LB: > { %s891_s16 = sadd.s32 1, %s841_s15   ;;  %s48_s17 = sadd.s32 1, %s837_s14  ;;  %s841_s15 = sphi %s876_s15, %s1095_s15   ;;  %s837_s14 = sphi %s874_s14, %s1094_s14   ;;  %s833_s13 = sphi %s872_s13, %s1093_s13   ;;  %s829_s12 = sphi %s870_s12, %s1092_s12  }
   0x7   : > { %s45_s18 = ssub.s32 %s841_s15, %s891_s16  ;;  %p55_p0 = scmp.ne.s32.totalorder %s837_s14, %s833_s13 }
   0x8   : > { %p46_p1 = scmp.eq.s32.totalorder %s45_s18, 0  ;;  %p56_p2 = scmp.eq.s32.totalorder %s841_s15, 0 }
   0x9   : > { %p638_p4 = scmp.lt.s32.totalorder %s841_s15, 4  ;;  %s151_s20 = sand.u32 1, %s841_s15  }
   0xa   : > { %s900_s19 = scalar_select %p46_p1, %s837_s14, %s48_s17  }
   0xb   : > { %p57_p3 = por %p56_p2, %p55_p0  ;;  %s153_s21 = sand.u32 1, %s837_s14  }
   0xc   : > { %s594_s22 = sshll.u32 %s153_s21, 5  ;;  %s595_s23 = sshll.u32 %s841_s15, 3 }
   0xd   : > { %s159_s26 = scalar_lea.hbm %s1081_s1, %s595_s23  ;;  %s155_s28 = scalar_lea.vmem [#allocation5], %s594_s22 }
   0xe   : > { %s160_s27 = sshll.u32 %s159_s26, 4  ;;  %s162_s29 = sshll.u32 %s155_s28, 4  ;;  %s161_s27 = int_to_ptr.hbm [resolvable:$true] %s160_s27  ;;  %s163_s29 = int_to_ptr.vmem [resolvable:$true] %s162_s29 }
   0xf   : > { %p914_p5 = pnand %p638_p4, %p57_p3  ;;  %s919_s4 = sadd.s32 4294967295, %s841_s15  }
  0x10   : > { %s921_s5 = scalar_lea.sflag [#allocation6], %s151_s20  ;;  %s681_s6 = sshra.s32 %s161_s27, 4  ;;  %s682_s6 = int_to_ptr.hbm [resolvable:$true] %s681_s6 }
  0x11   : > { %s683_s7 = scalar_lea.hbm %s682_s6, 32  ;;  %p685_p7 = pneg %p914_p5 }
  0x12   : > { %p684_p6 = scmp.ne.s32.totalorder %s682_s6, %s683_s7  ;;  %s688_s10 = scalar_lea.hbm %s1081_s1, 128 }
  0x13   : > { %p689_p10 = scmp.lt.s32.totalorder %s682_s6, %s1081_s1  ;;  %p690_p11 = scmp.lt.s32.totalorder %s688_s10, %s683_s7 }
  0x14   : > { %p686_p8 = pnand %p685_p7, %p684_p6 }
  0x15   : > { %p691_p12 = por %p690_p11, %p689_p10 }
  0x16   : > { %p687_p9 = pneg %p686_p8 }
  0x18   : > { %p692_p13 = pnand %p691_p12, %p687_p9 }
  0x1a   : > { %695 = shalt.err (!%p692_p13)
}
  0x1b   : > { %s843_s18 = smov 512   ;;  %s844_s20 = smov 128  }
  0x1c   : > { %s845_s22 = smov 8   ;;  %s590_s23 = sadd.s32 4294967294, %s841_s15  }
  0x1d   : > { %629 = dma.hbm_to_vmem [thread:$0]  (!%p914_p5), %s161_s27, 512, %s163_s29, %s921_s5, %s843_s18, %s844_s20, %s845_s22  }
  0x1e   : > { %p61_p1 = scmp.ne.s32.totalorder %s833_s13, %s829_s12  ;;  %p1084_p2 = scmp.eq.s32.totalorder %s919_s4, 0 }
  0x1f   : > { %p111_p3 = scmp.eq.s32.totalorder %s919_s4, 3  ;;  %p117_p4 = scmp.eq.s32.totalorder %s590_s23, 3 }
  0x20   : > { %p591_p6 = scmp.ge.s32.totalorder %s841_s15, 1  ;;  %p947_p8 = por %p1084_p2, %p61_p1 }
  0x21   : > { %p954_p9 = por %p111_p3, %p55_p0  ;;  %p958_p10 = por %p117_p4, %p61_p1 }
  0x22   : > { %p124_p11 = scmp.lt.s32.totalorder %s841_s15, 5  ;;  %s135_s29 = sshll.u32 %s1080_s0, 4  ;;  %s136_s29 = int_to_ptr.hbm [resolvable:$true] %s135_s29 }
  0x23   : > { %s846_s7 = smov [#allocation2]   ;;  %s178_s11 = scalar_lea.hbm %s1082_s2, %s841_s15 }
  0x24   : > { %p966_p12 = pnand %p591_p6, %p124_p11  ;;  %s137_s8 = sshll.u32 %s846_s7, 4  ;;  %s138_s8 = int_to_ptr.vmem [resolvable:$true] %s137_s8 }
  0x25   : > { %s180_s17 = sshll.u32 %s178_s11, 4  ;;  %s175_s18 = scalar_lea.vmem [#allocation7], %s153_s21  ;;  %s181_s17 = int_to_ptr.hbm [resolvable:$true] %s180_s17 }
  0x26   : > { %p622_p0 = pneg %p966_p12  ;;  %s182_s23 = sshll.u32 %s175_s18, 4  ;;  %s183_s23 = int_to_ptr.vmem [resolvable:$true] %s182_s23 }
  0x27   : > { %s741_s27 = sshra.s32 %s181_s17, 4  ;;  %s748_s10 = scalar_lea.hbm %s1082_s2, 4  ;;  %s742_s27 = int_to_ptr.hbm [resolvable:$true] %s741_s27 }
  0x28   : > { %p623_p13 = pnand %p622_p0, %p1084_p2  ;;  %s743_s28 = scalar_lea.hbm %s742_s27, 1 }
  0x29   : > { %p744_p1 = scmp.ne.s32.totalorder %s742_s27, %s743_s28  ;;  %p749_p6 = scmp.lt.s32.totalorder %s742_s27, %s1082_s2 }
  0x2a   : > { %625 = dma.hbm_to_vmem [thread:$0]  (!%p623_p13), %s136_s29, 256, %s138_s8, [#allocation3], %s844_s20, %s844_s20, %s845_s22  }
  0x2b   : > { %p746_p3 = pnand %p744_p1, %p685_p7  ;;  %p750_p11 = scmp.lt.s32.totalorder %s748_s10, %s743_s28 }
  0x2d   : > { %p747_p4 = pneg %p746_p3  ;;  %p751_p0 = por %p750_p11, %p749_p6 }
  0x2f   : > { %p752_p2 = pnand %p751_p0, %p747_p4 }
  0x31   : > { %755 = shalt.err (!%p752_p2)
}
  0x32   : > { %632 = dma.hbm_to_vmem [thread:$0]  (!%p914_p5), %s181_s17, 16, %s183_s23, %s921_s5  }
  0x33   : > { %191 = sbr.rel (%p966_p12) target bundleno = 239 (0xef), region = 32  ;;  %p1090_p7 = scmp.eq.s32.totalorder (!%p966_p12), %s919_s4, 0 }
  0x38   : > { %816 = dma.done.wait (%p1090_p7), [#allocation3], 256   ;;  %p1091_p13 = pmov %p1090_p7 }
  0x39   : > { %s198_s20 = sand.u32 1, %s919_s4   ;;  %s1003_s22 = sand.u32 1, %s833_s13  }
  0x3a   : > { %818 = vsyncadd (%p1091_p13), [#allocation3], 4294967040  ;;  %s598_s29 = sshll.u32 %s1003_s22, 5  ;;  %s199_s30 = scalar_lea.sflag [#allocation6], %s198_s20 }
  0x3b   : > { %s202_s8 = scalar_lea.vmem [#allocation5], %s598_s29 }
  0x3c   : > { %820 = dma.done.wait (%p947_p8), %s199_s30, 528  }
  0x3d   : > { %822 = vsyncadd (%p947_p8), %s199_s30, 4294966768  ;;  %vm249_vm0 = vcmask 261120   ;;  %v244_v0 = vld [vmem:[%s202_s8 + $0x18] sm:$0xff]  ;;  %v243_v1 = vld [vmem:[%s202_s8 + $0x10] sm:$0xff]  ;;  %s211_s5 = scalar_lea.vmem [#allocation7], %s1003_s22  ;;  %s599_s24 = sshll.u32 %s1003_s22, 4 }
  0x3e   : > { %v242_v2 = vld [vmem:[%s202_s8 + $0x8] sm:$0xff]  ;;  %v1010_v3 = vand.u32 4294901760, %v244_v0  ;;  %v1012_v4 = vand.u32 4294901760, %v243_v1  ;;  %v241_v6 = vld [vmem:[%s202_s8] sm:$0xff]  ;;  %v240_v7 = vld [vmem:[#allocation2 + $0x8] sm:$0xff]  ;;  %s601_s6 = sshll.u32 %s919_s4, 3 }
  0x3f   : > { %v1014_v5 = vand.u32 4294901760, %v242_v2  ;;  %v239_v8 = vld [vmem:[#allocation2] sm:$0xff]  ;;  %v1016_v9 = vand.u32 4294901760, %v241_v6  ;;  %v254_v10 = vsel %vm249_vm0, %v240_v7, 0  ;;  %s485_s23 = scalar_lea.hbm %s1083_s3, %s601_s6  ;;  %s238_s27 = scalar_lea.vmem [#allocation8], %s599_s24 }
  0x40   : > { %v251_v11 = vsel %vm249_vm0, %v239_v8, 0  ;;  %604 = vmatpush.msra.mxu2 %v1010_v3  ;;  %v306_v12 = vsub.f32 %v244_v0, %v1010_v3  ;;  %v1021_v13 = vand.u32 4294901760, %v254_v10  ;;  %v312_v14 = vsub.f32 %v243_v1, %v1012_v4  ;;  %269 = vmatpush.msra.mxu0 %v1010_v3  ;;  %v680_v39 = vld [vmem:[%s211_s5] ss:$0 sm:$0xff]  ;;  %s486_s28 = sshll.u32 %s238_s27, 4  ;;  %s488_s7 = sshll.u32 %s485_s23, 4  ;;  %s487_s28 = int_to_ptr.vmem [resolvable:$true] %s486_s28  ;;  %s489_s7 = int_to_ptr.hbm [resolvable:$true] %s488_s7 }
  0x41   : > { %v318_v15 = vsub.f32 %v242_v2, %v1014_v5  ;;  %v324_v16 = vsub.f32 %v241_v6, %v1016_v9  ;;  %v276_v17 = vand.u32 4294901760, %v251_v11  ;;  %s475_s4 = scalar_lea.sflag [#allocation4], %s1003_s22  ;;  %s785_s9 = sshra.s32 %s489_s7, 4  ;;  %s786_s9 = int_to_ptr.hbm [resolvable:$true] %s785_s9 }
  0x42   : > { %605 = vmatpush.msra.mxu2 %v1012_v4  ;;  %v307_v18 = vand.u32 4294901760, %v306_v12  ;;  %v285_v19 = vsub.f32 %v254_v10, %v1021_v13  ;;  %v313_v20 = vand.u32 4294901760, %v312_v14  ;;  %271 = vmatpush.msra.mxu0 %v1012_v4  ;;  %s787_s10 = scalar_lea.hbm %s786_s9, 16  ;;  %s791_s20 = scalar_lea.hbm %s1083_s3, 64 }
  0x43   : > { %v319_v21 = vand.u32 4294901760, %v318_v15  ;;  %v325_v22 = vand.u32 4294901760, %v324_v16  ;;  %v277_v23 = vsub.f32 %v251_v11, %v276_v17  ;;  %p788_p5 = scmp.ne.s32.totalorder %s786_s9, %s787_s10  ;;  %p792_p12 = scmp.lt.s32.totalorder %s786_s9, %s1083_s3 }
  0x44   : > { %606 = vmatpush.msra.mxu2 %v1014_v5  ;;  %v308_v24 = vsub.f32 %v306_v12, %v307_v18  ;;  %v286_v25 = vand.u32 4294901760, %v285_v19  ;;  %v314_v26 = vsub.f32 %v312_v14, %v313_v20  ;;  %273 = vmatpush.msra.mxu0 %v1014_v5  ;;  %p793_p1 = scmp.lt.s32.totalorder %s791_s20, %s787_s10 }
  0x45   : > { %v320_v27 = vsub.f32 %v318_v15, %v319_v21  ;;  %v278_v28 = vand.u32 4294901760, %v277_v23  ;;  %v326_v32 = vsub.f32 %v324_v16, %v325_v22  ;;  %p789_p2 = pnand %p788_p5, %p954_p9 }
  0x46   : > { %607 = vmatpush.msra.mxu2 %v1016_v9  ;;  %v309_v29 = vand.u32 4294901760, %v308_v24  ;;  %v287_v30 = vsub.f32 %v285_v19, %v286_v25  ;;  %v315_v31 = vand.u32 4294901760, %v314_v26  ;;  %275 = vmatpush.msra.mxu0 %v1016_v9  ;;  %p794_p3 = por %p793_p1, %p792_p12 }
  0x47   : > { %v279_v33 = vsub.f32 %v277_v23, %v278_v28  ;;  %v321_v35 = vand.u32 4294901760, %v320_v27  ;;  %v327_v37 = vand.u32 4294901760, %v326_v32  ;;  %p790_p8 = pneg %p789_p2 }
  0x48   : > { %352 = vmatpush.msrb.mxu2 %v306_v12  ;;  %421 = vmatpush.msrb.mxu0 %v307_v18  ;;  %v288_v34 = vand.u32 4294901760, %v287_v30 }
  0x49   : > { %608 = vmatpush.msra.mxu3 %v309_v29  ;;  %310 = vmatpush.msra.mxu1 %v309_v29  ;;  %v280_v36 = vand.u32 4294901760, %v279_v33  ;;  %p795_p4 = pnand %p794_p3, %p790_p8 }
  0x4a   : > { %355 = vmatpush.msrb.mxu2 %v312_v14  ;;  %425 = vmatpush.msrb.mxu0 %v313_v20 }
  0x4b   : > { %289 = vmatmul.f32.vlgmr.msra.gmra.mxu2 %v288_v34  ;;  %609 = vmatpush.msra.mxu3 %v315_v31 }
  0x4c   : > { %358 = vmatpush.msrb.mxu2 %v318_v15  ;;  %316 = vmatpush.msra.mxu1 %v315_v31 }
  0x4d   : > { %610 = vmatpush.msra.mxu3 %v321_v35  ;;  %281 = vmatmul.f32.vlgmr.msra.gmra.mxu0 %v280_v36 }
  0x4e   : > { %361 = vmatpush.msrb.mxu2 %v324_v16  ;;  %322 = vmatpush.msra.mxu1 %v321_v35 }
  0x4f   : > { %611 = vmatpush.msra.mxu3 %v327_v37  ;;  %429 = vmatpush.msrb.mxu0 %v319_v21 }
  0x50   : > { %334 = vmatmul.f32.vlgmr.msra.gmra.mxu3 %v1021_v13  ;;  %328 = vmatpush.msra.mxu1 %v327_v37 }
  0x51   : > { %386 = vmatpush.msrb.mxu3 %v1010_v3  ;;  %330 = vmatmul.f32.vlgmr.msra.gmra.mxu1 %v276_v17 }
  0x52   : > { %456 = vmatpush.msrb.mxu1 %v1010_v3  ;;  %433 = vmatpush.msrb.mxu0 %v325_v22 }
  0x53   : > { %364 = vmatmul.f32.vlgmr.msrb.gmra.mxu2 %v277_v23  ;;  %388 = vmatpush.msrb.mxu3 %v1012_v4 }
  0x54   : > { %458 = vmatpush.msrb.mxu1 %v1012_v4 }
  0x55   : > { %390 = vmatpush.msrb.mxu3 %v1014_v5  ;;  %435 = vmatmul.f32.vlgmr.msrb.gmra.mxu0 %v276_v17 }
  0x56   : > { %460 = vmatpush.msrb.mxu1 %v1014_v5 }
  0x57   : > { %392 = vmatpush.msrb.mxu3 %v1016_v9 }
  0x58   : > { %396 = vmatmul.f32.vlgmr.msrb.gmra.mxu3 %v278_v28  ;;  %462 = vmatpush.msrb.mxu1 %v1016_v9 }
  0x59   : > { %464 = vmatmul.f32.vlgmr.msrb.gmra.mxu1 %v276_v17 }
  0x5b   : > { %369 = vmatmul.f32.gmra.mxu2 %v285_v19 }
  0x5d   : > { %439 = vmatmul.f32.gmra.mxu0 %v1021_v13 }
  0x60   : > { %402 = vmatmul.f32.gmra.mxu3 %v286_v25 }
  0x61   : > { %468 = vmatmul.f32.gmra.mxu1 %v1021_v13 }
  0xca   : > { %v282_v38 = vpop.f32.mrf.mxu0 }
  0xcb   : > { %v283_v41 = vadd.f32 %v680_v39, %v282_v38 }
  0xce   : > { %v290_v40 = vpop.f32.mrf.mxu2  ;;  %v331_v42 = vpop.f32.mrf.mxu1 }
  0xcf   : > { %v332_v44 = vadd.f32 %v331_v42, %v283_v41  ;;  %v291_v50 = vadd.f32 %v680_v39, %v290_v40 }
  0xd2   : > { %v436_v47 = vpop.f32.mrf.mxu0 }
  0xd3   : > { %v335_v43 = vpop.f32.mrf.mxu3 }
  0xd4   : > { %v336_v54 = vadd.f32 %v335_v43, %v291_v50 }
  0xd6   : > { %v365_v45 = vpop.f32.mrf.mxu2  ;;  %v465_v49 = vpop.f32.mrf.mxu1 }
  0xd7   : > { %v366_v46 = vadd.f32 %v365_v45, %v332_v44 }
  0xda   : > { %v440_v58 = vpop.f32.mrf.mxu0 }
  0xdb   : > { %v397_v48 = vpop.f32.mrf.mxu3 }
  0xdc   : > { %v398_v51 = vadd.f32 %v397_v48, %v366_v46 }
  0xde   : > { %v437_v52 = vadd.f32 %v436_v47, %v398_v51  ;;  %v370_v53 = vpop.f32.mrf.mxu2  ;;  %v469_v60 = vpop.f32.mrf.mxu1 }
  0xdf   : > { %v371_v56 = vadd.f32 %v370_v53, %v336_v54 }
  0xe0   : > { %v466_v55 = vadd.f32 %v465_v49, %v437_v52 }
  0xe2   : > { %472 = vst [vmem:[%s238_s27] sm:$0xff] %v466_v55 }
  0xe3   : > { %v403_v57 = vpop.f32.mrf.mxu3 }
  0xe4   : > { %v404_v59 = vadd.f32 %v403_v57, %v371_v56 }
  0xe6   : > { %v441_v61 = vadd.f32 %v440_v58, %v404_v59 }
  0xe8   : > { %v470_v62 = vadd.f32 %v469_v60, %v441_v61 }
  0xea   : > { %473 = vst [vmem:[%s238_s27 + $0x8] sm:$0xff] %v470_v62 }
  0xeb   : > { %798 = shalt.err (!%p795_p4)
}
  0xec   : > { %s847_s22 = smov 128   ;;  %s848_s8 = smov 512  }
  0xed   : > { %s849_s5 = smov 8  }
  0xee   : > { %620 = dma.vmem_to_hbm [thread:$0]  (%p954_p9), %s487_s28, 256, %s489_s7, %s475_s4, %s847_s22, %s848_s8, %s849_s5  }
  0xef PF: > { %p640_p6 = scmp.ge.s32.totalorder %s841_s15, 2  ;;  %s503_s24 = sand.u32 1, %s829_s12  }
  0xf0   : > { %s504_s6 = scalar_lea.sflag [#allocation4], %s503_s24 }
  0xf1   : > { %p634_p11 = pnand %p640_p6, %p958_p10 }
  0xf3   : > { %p635_p0 = pneg %p634_p11 }
  0xf5   : > { %824 = dma.done.wait (%p635_p0), %s504_s6, 256  }
  0xf6   : > { %826 = vsyncadd (%p635_p0), %s504_s6, 4294967040  ;;  %p17_p7 = scmp.ge.s32.totalorder %s891_s16, 6   ;;  %s1092_s12 = smov %s833_s13 }
  0xf7   : > { %s1093_s13 = smov %s837_s14  ;;  %s1094_s14 = smov %s900_s19 }
  0xf8   : > { %s1095_s15 = smov %s891_s16  ;;  %19 = sbr.rel (!%p17_p7) target bundleno = 6 (0x6), region = 93 }
  0xfd   :  { %510 = vsyncpa [#allocation3], 1 }
  0xfe   :  { %512 = vsyncpa [#allocation3 + $0x1], 1 }
  0xff   :  { %513 = vsyncpa [#allocation6], 1 }
 0x100   :  { %515 = vsyncpa [#allocation6 + $0x1], 1 }
 0x101   :  { %516 = vsyncpa [#allocation4], 1 }
 0x102   :  { %518 = vsyncpa [#allocation4 + $0x1], 1 }

</bundles_post_ra>
